<compile_context>
chip_gen: v7x
topology: tpu7x:2x2x1
jax: 0.10.0
libtpu: 0.0.40
codegen_flags: <defaults>
</compile_context>

<pallas_src>
import math
from functools import partial

import jax
import jax.numpy as jnp
from jax.experimental import pallas as pl
from jax.experimental.pallas import tpu as pltpu

EPS = 1e-5            # BatchNorm2d default eps
TM_CAP = 2048         # max matmul row tile (rows)
TPIX_CAP = 8192       # max channel-stats column tile (elements)


def _round_up(n, m):
    return -(-n // m) * m


def _largest_divisor_multiple(n, unit, cap):
    """Largest multiple of `unit` that divides `n` and is <= cap (None if n % unit)."""
    if n % unit != 0:
        return None
    k = min(cap, n) // unit
    while k >= 1:
        c = k * unit
        if n % c == 0:
            return c
        k -= 1
    return unit


# --------------------------------------------------------------------------
# Pallas kernels
# --------------------------------------------------------------------------
def _channel_stats_kernel(x_ref, sum_ref, sq_ref):
    """in_norm batch stats: per-(b,c) row sum / sum-of-squares accumulated over
    fat column tiles.  Accumulators stay VMEM-resident across the 'arbitrary'
    column-tile grid axis.
    """
    @pl.when(pl.program_id(0) == 0)
    def _():
        sum_ref[...] = jnp.zeros_like(sum_ref)
        sq_ref[...] = jnp.zeros_like(sq_ref)

    x = x_ref[...]
    sum_ref[...] += jnp.sum(x, axis=1, keepdims=True)
    sq_ref[...] += jnp.sum(x * x, axis=1, keepdims=True)
    # TODO(synk): emit per-tile partials instead of a resident accumulator so
    # this (pure HBM read) pass can also shard across v7x's two TensorCores.


def _matmul_stats_kernel(p_ref, w_ref, b_ref, y_ref, part_ref):
    """Patch-embedding matmul (bf16 operands, f32 accumulate) + out_norm partials.

    in_norm is pre-folded into w_ref / b_ref, so the body is a pure MXU matmul.
    part_ref is an (8, D) per-tile block: row 0 = column sums, row 1 = column
    sum-of-squares of this tile (rows 2..7 zero).  Emitting per-tile partials
    (no resident accumulator, no row mask) keeps the grid axis 'parallel';
    zero-padded rows contribute exactly `bias` and are corrected in the wrapper.
    """
    y = jnp.dot(p_ref[...], w_ref[...], preferred_element_type=jnp.float32) + b_ref[...]
    y_ref[...] = y.astype(y_ref.dtype)            # bf16 store: halves y HBM traffic

    csum = jnp.sum(y, axis=0, keepdims=True)      # (1, D) f32
    csq = jnp.sum(y * y, axis=0, keepdims=True)   # (1, D) f32
    row = jax.lax.broadcasted_iota(jnp.int32, part_ref.shape, 0)
    part_ref[...] = jnp.where(row == 0, csum, jnp.where(row == 1, csq, 0.0))


def _assemble_kernel(y_ref, temb_ref, soi_ref, nl_ref, eoi_ref, inv_ref, shift_ref,
                     o_ref, *, Hp, Wp):
    """Fused out_norm affine + sequence assembly.

    Reads one batch's bf16 conv output once, applies the per-column affine
    (batch statistics folded in the wrapper) and writes the final (L, D)
    sequence block once — no intermediate normalize pass, no concat copies.
    Layout: [temb, soi, row0 toks, nl, row1 toks, nl, ..., row_{Hp-1} toks, eoi].
    """
    yn = y_ref[...].astype(jnp.float32) * inv_ref[...] + shift_ref[...]   # (Hp*Wp, D)
    o_ref[0:1, :] = temb_ref[...]
    o_ref[1:2, :] = soi_ref[...]
    for i in range(Hp):                              # static trip count (trace-time unroll)
        base = 2 + i * (Wp + 1)
        o_ref[base:base + Wp, :] = yn[i * Wp:(i + 1) * Wp, :]
        sep = nl_ref[...] if i < Hp - 1 else eoi_ref[...]
        o_ref[base + Wp:base + Wp + 1, :] = sep


# --------------------------------------------------------------------------
# Parameters (deterministic, synthetic)
# --------------------------------------------------------------------------
def init_params(key, in_dim, out_dim, patch_size, expand_size=0):
    k = patch_size + 2 * expand_size
    ks = jax.random.split(key, 10)
    return dict(
        soi=jax.random.normal(ks[0], (out_dim,), jnp.float32),
        nl=jax.random.normal(ks[1], (out_dim,), jnp.float32),
        eoi=jax.random.normal(ks[2], (out_dim,), jnp.float32),
        in_gamma=1.0 + 0.1 * jax.random.normal(ks[3], (in_dim,), jnp.float32),
        in_beta=0.1 * jax.random.normal(ks[4], (in_dim,), jnp.float32),
        conv_w=jax.random.normal(ks[5], (out_dim, in_dim, k, k), jnp.float32)
        / math.sqrt(in_dim * k * k),
        out_gamma=1.0 + 0.1 * jax.random.normal(ks[6], (out_dim,), jnp.float32),
        out_beta=0.1 * jax.random.normal(ks[7], (out_dim,), jnp.float32),
        fc_w=jax.random.normal(ks[8], (out_dim, out_dim), jnp.float32)
        / math.sqrt(out_dim),
        fc_b=0.1 * jax.random.normal(ks[9], (out_dim,), jnp.float32),
    )
    # NOTE: the module's self.ln (LayerNorm) is never used in forward(); omitted.


# --------------------------------------------------------------------------
# Forward (Pallas hot path + JAX glue)
# --------------------------------------------------------------------------
def latent_encoder_forward(x, t, params, *, patch_size, expand_size=0):
    # TODO(synk): expand_size > 0 adds conv zero-padding *after* in_norm, which
    # conflicts with folding in_norm into the weights; only expand_size == 0 is
    # implemented.
    assert expand_size == 0
    B, C, H, W = x.shape
    p = patch_size
    D = params["soi"].shape[0]
    assert D % 2 == 0  # odd-dim temb padding branch not exercised

    # ---- zero-pad H, W up to multiples of patch_size (nn.ZeroPad2d) ----
    # NOTE: ZeroPad2d runs BEFORE in_norm in the PyTorch module, so the pad
    # zeros are intentionally part of the batch-norm statistics below.
    Hpad, Wpad = _round_up(H, p), _round_up(W, p)
    if (Hpad, Wpad) != (H, W):
        x = jnp.pad(x, ((0, 0), (0, 0), (0, Hpad - H), (0, Wpad - W)))
    Hp, Wp = Hpad // p, Wpad // p

    # ---- in_norm batch statistics: tiled reduction over a free (B*C, npix) view ----
    BC = B * C
    npix = Hpad * Wpad
    x2 = x.reshape(BC, npix)                                      # free reshape of NCHW
    tpix_cap = max(128, min(TPIX_CAP, ((2 << 20) // (BC * 4)) // 128 * 128))
    TPIX = _largest_divisor_multiple(npix, 128, tpix_cap)
    if TPIX is None or (TPIX < 1024 and npix >= 8 * 1024):
        # fallback: pad columns (zeros do not bias sums; divisor stays B*npix)
        TPIX = min(tpix_cap, _round_up(npix, 128))
        npix_pad = _round_up(npix, TPIX)
        x2 = jnp.pad(x2, ((0, 0), (0, npix_pad - npix)))
    else:
        npix_pad = npix
    row_sum, row_sq = pl.pallas_call(
        _channel_stats_kernel,
        out_shape=(
            jax.ShapeDtypeStruct((BC, 1), jnp.float32),
            jax.ShapeDtypeStruct((BC, 1), jnp.float32),
        ),
        grid=(npix_pad // TPIX,),
        in_specs=[pl.BlockSpec((BC, TPIX), lambda j: (0, j))],
        out_specs=(
            pl.BlockSpec((BC, 1), lambda j: (0, 0)),
            pl.BlockSpec((BC, 1), lambda j: (0, 0)),
        ),
        compiler_params=pltpu.CompilerParams(dimension_semantics=("arbitrary",)),
    )(x2)
    # TODO(synk): E[x^2]-E[x]^2 in f32 can cancel badly for channels with
    # |mean| >> std; switch to a shifted accumulation if inputs are not ~zero-mean.
    n_in = B * npix
    mean_c = jnp.sum(row_sum.reshape(B, C), axis=0) / n_in
    var_c = jnp.sum(row_sq.reshape(B, C), axis=0) / n_in - mean_c * mean_c
    inv_c = params["in_gamma"] * jax.lax.rsqrt(var_c + EPS)       # (C,)
    shift_c = params["in_beta"] - mean_c * inv_c                  # (C,)

    # ---- fold in_norm into the conv weights (one-time tiny op) ----
    K = C * p * p
    w_mat = params["conv_w"].reshape(D, K).T                      # (K, D), cols = (c,di,dj)
    col_scale = jnp.repeat(inv_c, p * p)                          # (K,)
    col_shift = jnp.repeat(shift_c, p * p)                        # (K,)
    w_scaled = (w_mat * col_scale[:, None]).astype(jnp.bfloat16)  # bf16 MXU operand
    bias = (col_shift @ w_mat).reshape(1, D)                      # f32

    # ---- im2col patch rows, single bf16 materialization ----
    # TODO(synk): a manual-DMA gather feeding NCHW x straight into the matmul
    # kernel would remove this remaining im2col pass entirely.
    M = B * Hp * Wp
    tm_cap = max(8, min(TM_CAP, ((2 << 20) // (K * 2)) // 8 * 8))
    TM = _largest_divisor_multiple(M, 8, tm_cap)
    if TM is None or (TM < 256 and M >= 8 * 256):
        TM = min(tm_cap, _round_up(M, 8))
        Mpad = _round_up(M, TM)
    else:
        Mpad = M
    patches = (
        x.astype(jnp.bfloat16)                                    # cast before transpose
        .reshape(B, C, Hp, p, Wp, p)
        .transpose(0, 2, 4, 1, 3, 5)
        .reshape(M, K)
    )
    if Mpad != M:
        patches = jnp.pad(patches, ((0, Mpad - M), (0, 0)))

    # ---- fused conv matmul + out_norm per-tile partial statistics ----
    n_tiles = Mpad // TM
    y, part = pl.pallas_call(
        _matmul_stats_kernel,
        out_shape=(
            jax.ShapeDtypeStruct((Mpad, D), jnp.bfloat16),
            jax.ShapeDtypeStruct((n_tiles * 8, D), jnp.float32),
        ),
        grid=(n_tiles,),
        in_specs=[
            pl.BlockSpec((TM, K), lambda i: (i, 0)),
            pl.BlockSpec((K, D), lambda i: (0, 0)),
            pl.BlockSpec((1, D), lambda i: (0, 0)),
        ],
        out_specs=(
            pl.BlockSpec((TM, D), lambda i: (i, 0)),
            pl.BlockSpec((8, D), lambda i: (i, 0)),
        ),
        compiler_params=pltpu.CompilerParams(dimension_semantics=("parallel",)),
    )(patches, w_scaled, bias)

    # ---- reduce partials, correct for zero-padded rows (they equal `bias`) ----
    part = part.reshape(n_tiles, 8, D)
    csum = jnp.sum(part[:, 0, :], axis=0)
    csq = jnp.sum(part[:, 1, :], axis=0)
    if Mpad != M:
        pad_rows = float(Mpad - M)
        csum = csum - pad_rows * bias[0]
        csq = csq - pad_rows * (bias[0] * bias[0])
    mean_o = csum / M
    var_o = csq / M - mean_o * mean_o
    inv_o = (params["out_gamma"] * jax.lax.rsqrt(var_o + EPS)).reshape(1, D)
    shift_o = (params["out_beta"] - mean_o * inv_o[0]).reshape(1, D)

    # ---- timestep embedding (plain JAX; microseconds of work) ----
    half = D // 2
    freq = jnp.exp(
        jnp.arange(half, dtype=jnp.float32) * -(math.log(10000.0) / max(half - 1, 1))
    )
    args = t.reshape(B, 1).astype(jnp.float32) * freq[None, :]
    emb = jnp.concatenate([jnp.sin(args), jnp.cos(args)], axis=1)
    z = emb @ params["fc_w"].T + params["fc_b"][None, :]
    temb = z * jax.nn.sigmoid(z)                                  # (B, D)

    # ---- fused out_norm affine + sequence assembly (one read of y, one write of out) ----
    HpWp = Hp * Wp
    L = 2 + Hp * (Wp + 1)
    y3 = y[:M].reshape(B, HpWp, D)                                # free when Mpad == M
    seq = pl.pallas_call(
        partial(_assemble_kernel, Hp=Hp, Wp=Wp),
        out_shape=jax.ShapeDtypeStruct((B, L, D), jnp.float32),
        grid=(B,),
        in_specs=[
            pl.BlockSpec((None, HpWp, D), lambda b: (b, 0, 0)),   # y (bf16), per batch
            pl.BlockSpec((None, 1, D), lambda b: (b, 0, 0)),      # temb row
            pl.BlockSpec((1, D), lambda b: (0, 0)),               # soi
            pl.BlockSpec((1, D), lambda b: (0, 0)),               # nl
            pl.BlockSpec((1, D), lambda b: (0, 0)),               # eoi
            pl.BlockSpec((1, D), lambda b: (0, 0)),               # inv_o
            pl.BlockSpec((1, D), lambda b: (0, 0)),               # shift_o
        ],
        out_specs=pl.BlockSpec((None, L, D), lambda b: (b, 0, 0)),
        compiler_params=pltpu.CompilerParams(dimension_semantics=("parallel",)),
    )(
        y3,
        temb.reshape(B, 1, D),
        params["soi"].reshape(1, D),
        params["nl"].reshape(1, D),
        params["eoi"].reshape(1, D),
        inv_o,
        shift_o,
    )
    return seq


# --------------------------------------------------------------------------
# Pure-JAX reference (same math) for a correctness check
# --------------------------------------------------------------------------
def latent_encoder_reference(x, t, params, *, patch_size, expand_size=0):
    B, C, H, W = x.shape
    p = patch_size
    out_dim = params["soi"].shape[0]
    Hpad, Wpad = _round_up(H, p), _round_up(W, p)
    x = jnp.pad(x, ((0, 0), (0, 0), (0, Hpad - H), (0, Wpad - W)))
    Hp, Wp = Hpad // p, Wpad // p

    m = jnp.mean(x, axis=(0, 2, 3))
    v = jnp.mean((x - m[None, :, None, None]) ** 2, axis=(0, 2, 3))
    xn = (
        params["in_gamma"][None, :, None, None]
        * (x - m[None, :, None, None])
        * jax.lax.rsqrt(v + EPS)[None, :, None, None]
        + params["in_beta"][None, :, None, None]
    )
    y = jax.lax.conv_general_dilated(
        xn,
        params["conv_w"],
        window_strides=(p, p),
        padding=[(expand_size, expand_size)] * 2,
        dimension_numbers=("NCHW", "OIHW", "NCHW"),
    )
    m2 = jnp.mean(y, axis=(0, 2, 3))
    v2 = jnp.mean((y - m2[None, :, None, None]) ** 2, axis=(0, 2, 3))
    yn = (
        params["out_gamma"][None, :, None, None]
        * (y - m2[None, :, None, None])
        * jax.lax.rsqrt(v2 + EPS)[None, :, None, None]
        + params["out_beta"][None, :, None, None]
    )
    tok = jnp.transpose(yn, (0, 2, 3, 1))

    half = out_dim // 2
    freq = jnp.exp(
        jnp.arange(half, dtype=jnp.float32) * -(math.log(10000.0) / max(half - 1, 1))
    )
    args = t.reshape(B, 1).astype(jnp.float32) * freq[None, :]
    emb = jnp.concatenate([jnp.sin(args), jnp.cos(args)], axis=1)
    z = emb @ params["fc_w"].T + params["fc_b"][None, :]
    temb = z * jax.nn.sigmoid(z)

    brd = lambda w: jnp.broadcast_to(w[None, None, :], (B, 1, out_dim))
    parts = [temb[:, None, :], brd(params["soi"])]
    for i in range(Hp):
        parts.append(tok[:, i])
        if i < Hp - 1:
            parts.append(brd(params["nl"]))
    parts.append(brd(params["eoi"]))
    return jnp.concatenate(parts, axis=1)


# --------------------------------------------------------------------------
if __name__ == "__main__":
    in_dim, out_dim, patch_size = 4, 32, 4
    B, H, W = 2, 16, 16

    key = jax.random.PRNGKey(0)
    kx, kt, kp = jax.random.split(key, 3)
    x = jax.random.normal(kx, (B, in_dim, H, W), jnp.float32)
    t = jax.random.uniform(kt, (B,), jnp.float32, 0.0, 1000.0)
    params = init_params(kp, in_dim, out_dim, patch_size)

    fwd = jax.jit(partial(latent_encoder_forward, patch_size=patch_size))
    out = jax.block_until_ready(fwd(x, t, params))

    Hp = Wp = H // patch_size
    expected_len = Hp * Wp + Hp + 2
    assert out.shape == (B, expected_len, out_dim), out.shape

    ref = latent_encoder_reference(x, t, params, patch_size=patch_size)
    err = float(jnp.max(jnp.abs(out - ref)))
    assert err < 5e-2, f"max abs err {err}"

    print("KERNEL_OK")
</pallas_src>

<mosaic_0001>
module attributes {stable_mosaic.version = 11 : i64} {
  func.func @_channel_stats_kernel(%arg0: i32, %arg1: memref<8x256xf32, #tpu.memory_space<vmem>>, %arg2: memref<8x1xf32, #tpu.memory_space<vmem>>, %arg3: memref<8x1xf32, #tpu.memory_space<vmem>>) attributes {dimension_semantics = [#tpu.dimension_semantics<arbitrary>], iteration_bounds = array<i64: 1>, scalar_prefetch = 0 : i64, scratch_operands = 0 : i64, tpu.core_type = #tpu.core_type<tc>, window_params = [{transform_indices = @transform_0, window_bounds = array<i64: 8, 256>}, {pipeline_mode = #tpu.pipeline_mode<synchronous>, transform_indices = @transform_1, window_bounds = array<i64: 8, 1>}, {pipeline_mode = #tpu.pipeline_mode<synchronous>, transform_indices = @transform_2, window_bounds = array<i64: 8, 1>}]} {
    %c0_i32 = arith.constant 0 : i32
    %0 = arith.cmpi eq, %arg0, %c0_i32 : i32
    %1 = arith.extui %0 : i1 to i32
    %c0_i32_0 = arith.constant 0 : i32
    %2 = arith.cmpi ne, %1, %c0_i32_0 : i32
    scf.if %2 {
      %cst_11 = arith.constant 0.000000e+00 : f32
      %15 = vector.broadcast %cst_11 : f32 to vector<8x1xf32>
      %c0_12 = arith.constant 0 : index
      %c0_13 = arith.constant 0 : index
      %16 = vector.load %arg2[%c0_12, %c0_13] : memref<8x1xf32, #tpu.memory_space<vmem>>, vector<8x1xf32>
      tpu.vector_store %arg2[%c0_12, %c0_13], %15 {strides = array<i32>} : memref<8x1xf32, #tpu.memory_space<vmem>>, vector<8x1xf32>,
      %cst_14 = arith.constant 0.000000e+00 : f32
      %17 = vector.broadcast %cst_14 : f32 to vector<8x1xf32>
      %c0_15 = arith.constant 0 : index
      %c0_16 = arith.constant 0 : index
      %18 = vector.load %arg3[%c0_15, %c0_16] : memref<8x1xf32, #tpu.memory_space<vmem>>, vector<8x1xf32>
      tpu.vector_store %arg3[%c0_15, %c0_16], %17 {strides = array<i32>} : memref<8x1xf32, #tpu.memory_space<vmem>>, vector<8x1xf32>,
    } else {
    }
    %c0 = arith.constant 0 : index
    %c0_1 = arith.constant 0 : index
    %3 = vector.load %arg1[%c0, %c0_1] : memref<8x256xf32, #tpu.memory_space<vmem>>, vector<8x256xf32>
    %c0_2 = arith.constant 0 : index
    %c0_3 = arith.constant 0 : index
    %4 = vector.load %arg2[%c0_2, %c0_3] : memref<8x1xf32, #tpu.memory_space<vmem>>, vector<8x1xf32>
    %cst = arith.constant dense<0.000000e+00> : vector<8xf32>
    %5 = vector.multi_reduction <add>, %3, %cst [1] : vector<8x256xf32> to vector<8xf32>
    %6 = vector.shape_cast %5 : vector<8xf32> to vector<8x1xf32>
    %7 = arith.addf %4, %6 : vector<8x1xf32>
    %c0_4 = arith.constant 0 : index
    %c0_5 = arith.constant 0 : index
    %8 = vector.load %arg2[%c0_4, %c0_5] : memref<8x1xf32, #tpu.memory_space<vmem>>, vector<8x1xf32>
    tpu.vector_store %arg2[%c0_4, %c0_5], %7 {strides = array<i32>} : memref<8x1xf32, #tpu.memory_space<vmem>>, vector<8x1xf32>,
    %c0_6 = arith.constant 0 : index
    %c0_7 = arith.constant 0 : index
    %9 = vector.load %arg3[%c0_6, %c0_7] : memref<8x1xf32, #tpu.memory_space<vmem>>, vector<8x1xf32>
    %10 = arith.mulf %3, %3 : vector<8x256xf32>
    %cst_8 = arith.constant dense<0.000000e+00> : vector<8xf32>
    %11 = vector.multi_reduction <add>, %10, %cst_8 [1] : vector<8x256xf32> to vector<8xf32>
    %12 = vector.shape_cast %11 : vector<8xf32> to vector<8x1xf32>
    %13 = arith.addf %9, %12 : vector<8x1xf32>
    %c0_9 = arith.constant 0 : index
    %c0_10 = arith.constant 0 : index
    %14 = vector.load %arg3[%c0_9, %c0_10] : memref<8x1xf32, #tpu.memory_space<vmem>>, vector<8x1xf32>
    tpu.vector_store %arg3[%c0_9, %c0_10], %13 {strides = array<i32>} : memref<8x1xf32, #tpu.memory_space<vmem>>, vector<8x1xf32>,
    return
  }
  func.func @transform_0(%arg0: i32) -> (i32, i32) {
    %c0_i32 = arith.constant 0 : i32
    %c0_i32_0 = arith.constant 0 : i32
    return %c0_i32, %arg0 : i32, i32
  }
  func.func @transform_1(%arg0: i32) -> (i32, i32) {
    %c0_i32 = arith.constant 0 : i32
    %c0_i32_0 = arith.constant 0 : i32
    %c0_i32_1 = arith.constant 0 : i32
    return %c0_i32, %c0_i32_0 : i32, i32
  }
  func.func @transform_2(%arg0: i32) -> (i32, i32) {
    %c0_i32 = arith.constant 0 : i32
    %c0_i32_0 = arith.constant 0 : i32
    %c0_i32_1 = arith.constant 0 : i32
    return %c0_i32, %c0_i32_0 : i32, i32
  }
}

module attributes {stable_mosaic.version = 11 : i64} {
  func.func @_matmul_stats_kernel(%arg0: i32, %arg1: memref<32x64xbf16, #tpu.memory_space<vmem>>, %arg2: memref<64x32xbf16, #tpu.memory_space<vmem>>, %arg3: memref<1x32xf32, #tpu.memory_space<vmem>>, %arg4: memref<32x32xbf16, #tpu.memory_space<vmem>>, %arg5: memref<8x32xf32, #tpu.memory_space<vmem>>) attributes {dimension_semantics = [#tpu.dimension_semantics<parallel>], iteration_bounds = array<i64: 1>, scalar_prefetch = 0 : i64, scratch_operands = 0 : i64, tpu.core_type = #tpu.core_type<tc>, window_params = [{transform_indices = @transform_0, window_bounds = array<i64: 32, 64>}, {pipeline_mode = #tpu.pipeline_mode<synchronous>, transform_indices = @transform_1, window_bounds = array<i64: 64, 32>}, {pipeline_mode = #tpu.pipeline_mode<synchronous>, transform_indices = @transform_2, window_bounds = array<i64: 1, 32>}, {transform_indices = @transform_3, window_bounds = array<i64: 32, 32>}, {transform_indices = @transform_4, window_bounds = array<i64: 8, 32>}]} {
    %c0 = arith.constant 0 : index
    %c0_0 = arith.constant 0 : index
    %0 = vector.load %arg1[%c0, %c0_0] : memref<32x64xbf16, #tpu.memory_space<vmem>>, vector<32x64xbf16>
    %c0_1 = arith.constant 0 : index
    %c0_2 = arith.constant 0 : index
    %1 = vector.load %arg2[%c0_1, %c0_2] : memref<64x32xbf16, #tpu.memory_space<vmem>>, vector<64x32xbf16>
    %cst = arith.constant dense<0.000000e+00> : vector<32x32xf32>
    %2 = tpu.matmul %0, %1, %cst {dimension_numbers = #tpu.dot_dimension_numbers<[1], [0], [0], [1], [0, 0, 1, 1], [], []>} : vector<32x64xbf16>, vector<64x32xbf16>, vector<32x32xf32> -> vector<32x32xf32>
    %c0_3 = arith.constant 0 : index
    %c0_4 = arith.constant 0 : index
    %3 = vector.load %arg3[%c0_3, %c0_4] : memref<1x32xf32, #tpu.memory_space<vmem>>, vector<1x32xf32>
    %4 = vector.broadcast %3 : vector<1x32xf32> to vector<32x32xf32>
    %5 = arith.addf %2, %4 : vector<32x32xf32>
    %6 = arith.truncf %5 : vector<32x32xf32> to vector<32x32xbf16>
    %c0_5 = arith.constant 0 : index
    %c0_6 = arith.constant 0 : index
    %7 = vector.load %arg4[%c0_5, %c0_6] : memref<32x32xbf16, #tpu.memory_space<vmem>>, vector<32x32xbf16>
    tpu.vector_store %arg4[%c0_5, %c0_6], %6 {strides = array<i32>} : memref<32x32xbf16, #tpu.memory_space<vmem>>, vector<32x32xbf16>,
    %cst_7 = arith.constant dense<0.000000e+00> : vector<32xf32>
    %8 = vector.multi_reduction <add>, %5, %cst_7 [0] : vector<32x32xf32> to vector<32xf32>
    %9 = vector.shape_cast %8 : vector<32xf32> to vector<1x32xf32>
    %10 = arith.mulf %5, %5 : vector<32x32xf32>
    %cst_8 = arith.constant dense<0.000000e+00> : vector<32xf32>
    %11 = vector.multi_reduction <add>, %10, %cst_8 [0] : vector<32x32xf32> to vector<32xf32>
    %12 = vector.shape_cast %11 : vector<32xf32> to vector<1x32xf32>
    %13 = tpu.iota {dimensions = array<i32: 0>} : vector<8x32xi32>
    %c0_i32 = arith.constant 0 : i32
    %14 = vector.broadcast %c0_i32 : i32 to vector<8x32xi32>
    %15 = arith.cmpi eq, %13, %14 : vector<8x32xi32>
    %c1_i32 = arith.constant 1 : i32
    %16 = vector.broadcast %c1_i32 : i32 to vector<8x32xi32>
    %17 = arith.cmpi eq, %13, %16 : vector<8x32xi32>
    %cst_9 = arith.constant 0.000000e+00 : f32
    %18 = vector.shape_cast %12 : vector<1x32xf32> to vector<1x32xf32>
    %19 = vector.broadcast %18 : vector<1x32xf32> to vector<8x32xf32>
    %20 = vector.broadcast %cst_9 : f32 to vector<8x32xf32>
    %21 = arith.select %17, %19, %20 : vector<8x32xi1>, vector<8x32xf32>
    %22 = vector.shape_cast %9 : vector<1x32xf32> to vector<1x32xf32>
    %23 = vector.broadcast %22 : vector<1x32xf32> to vector<8x32xf32>
    %24 = arith.select %15, %23, %21 : vector<8x32xi1>, vector<8x32xf32>
    %c0_10 = arith.constant 0 : index
    %c0_11 = arith.constant 0 : index
    %25 = vector.load %arg5[%c0_10, %c0_11] : memref<8x32xf32, #tpu.memory_space<vmem>>, vector<8x32xf32>
    tpu.vector_store %arg5[%c0_10, %c0_11], %24 {strides = array<i32>} : memref<8x32xf32, #tpu.memory_space<vmem>>, vector<8x32xf32>,
    return
  }
  func.func @transform_0(%arg0: i32) -> (i32, i32) {
    %c0_i32 = arith.constant 0 : i32
    %c0_i32_0 = arith.constant 0 : i32
    return %arg0, %c0_i32 : i32, i32
  }
  func.func @transform_1(%arg0: i32) -> (i32, i32) {
    %c0_i32 = arith.constant 0 : i32
    %c0_i32_0 = arith.constant 0 : i32
    %c0_i32_1 = arith.constant 0 : i32
    return %c0_i32, %c0_i32_0 : i32, i32
  }
  func.func @transform_2(%arg0: i32) -> (i32, i32) {
    %c0_i32 = arith.constant 0 : i32
    %c0_i32_0 = arith.constant 0 : i32
    %c0_i32_1 = arith.constant 0 : i32
    return %c0_i32, %c0_i32_0 : i32, i32
  }
  func.func @transform_3(%arg0: i32) -> (i32, i32) {
    %c0_i32 = arith.constant 0 : i32
    %c0_i32_0 = arith.constant 0 : i32
    return %arg0, %c0_i32 : i32, i32
  }
  func.func @transform_4(%arg0: i32) -> (i32, i32) {
    %c0_i32 = arith.constant 0 : i32
    %c0_i32_0 = arith.constant 0 : i32
    return %arg0, %c0_i32 : i32, i32
  }
}

module attributes {stable_mosaic.version = 11 : i64} {
  func.func @_assemble_kernel(%arg0: i32, %arg1: memref<1x16x32xbf16, #tpu.memory_space<vmem>>, %arg2: memref<1x1x32xf32, #tpu.memory_space<vmem>>, %arg3: memref<1x32xf32, #tpu.memory_space<vmem>>, %arg4: memref<1x32xf32, #tpu.memory_space<vmem>>, %arg5: memref<1x32xf32, #tpu.memory_space<vmem>>, %arg6: memref<1x32xf32, #tpu.memory_space<vmem>>, %arg7: memref<1x32xf32, #tpu.memory_space<vmem>>, %arg8: memref<1x22x32xf32, #tpu.memory_space<vmem>>) attributes {dimension_semantics = [#tpu.dimension_semantics<parallel>], iteration_bounds = array<i64: 2>, scalar_prefetch = 0 : i64, scratch_operands = 0 : i64, tpu.core_type = #tpu.core_type<tc>, window_params = [{transform_indices = @transform_0, window_bounds = array<i64: 1, 16, 32>}, {transform_indices = @transform_1, window_bounds = array<i64: 1, 1, 32>}, {pipeline_mode = #tpu.pipeline_mode<synchronous>, transform_indices = @transform_2, window_bounds = array<i64: 1, 32>}, {pipeline_mode = #tpu.pipeline_mode<synchronous>, transform_indices = @transform_3, window_bounds = array<i64: 1, 32>}, {pipeline_mode = #tpu.pipeline_mode<synchronous>, transform_indices = @transform_4, window_bounds = array<i64: 1, 32>}, {pipeline_mode = #tpu.pipeline_mode<synchronous>, transform_indices = @transform_5, window_bounds = array<i64: 1, 32>}, {pipeline_mode = #tpu.pipeline_mode<synchronous>, transform_indices = @transform_6, window_bounds = array<i64: 1, 32>}, {transform_indices = @transform_7, window_bounds = array<i64: 1, 22, 32>}]} {
    %c0 = arith.constant 0 : index
    %c0_0 = arith.constant 0 : index
    %c0_1 = arith.constant 0 : index
    %0 = vector.load %arg1[%c0, %c0_0, %c0_1] : memref<1x16x32xbf16, #tpu.memory_space<vmem>>, vector<1x16x32xbf16>
    %1 = vector.shape_cast %0 : vector<1x16x32xbf16> to vector<16x32xbf16>
    %2 = arith.extf %1 : vector<16x32xbf16> to vector<16x32xf32>
    %c0_2 = arith.constant 0 : index
    %c0_3 = arith.constant 0 : index
    %3 = vector.load %arg6[%c0_2, %c0_3] : memref<1x32xf32, #tpu.memory_space<vmem>>, vector<1x32xf32>
    %4 = vector.broadcast %3 : vector<1x32xf32> to vector<16x32xf32>
    %5 = arith.mulf %2, %4 : vector<16x32xf32>
    %c0_4 = arith.constant 0 : index
    %c0_5 = arith.constant 0 : index
    %6 = vector.load %arg7[%c0_4, %c0_5] : memref<1x32xf32, #tpu.memory_space<vmem>>, vector<1x32xf32>
    %7 = vector.broadcast %6 : vector<1x32xf32> to vector<16x32xf32>
    %8 = arith.addf %5, %7 : vector<16x32xf32>
    %c0_6 = arith.constant 0 : index
    %c0_7 = arith.constant 0 : index
    %c0_8 = arith.constant 0 : index
    %9 = vector.load %arg2[%c0_6, %c0_7, %c0_8] : memref<1x1x32xf32, #tpu.memory_space<vmem>>, vector<1x1x32xf32>
    %10 = vector.shape_cast %9 : vector<1x1x32xf32> to vector<1x32xf32>
    %c0_9 = arith.constant 0 : index
    %c0_10 = arith.constant 0 : index
    %c0_11 = arith.constant 0 : index
    %11 = vector.load %arg8[%c0_9, %c0_10, %c0_11] : memref<1x22x32xf32, #tpu.memory_space<vmem>>, vector<1x1x32xf32>
    %12 = vector.shape_cast %11 : vector<1x1x32xf32> to vector<1x32xf32>
    %13 = vector.shape_cast %10 : vector<1x32xf32> to vector<1x1x32xf32>
    tpu.vector_store %arg8[%c0_9, %c0_10, %c0_11], %13 {strides = array<i32>} : memref<1x22x32xf32, #tpu.memory_space<vmem>>, vector<1x1x32xf32>,
    %c0_12 = arith.constant 0 : index
    %c0_13 = arith.constant 0 : index
    %14 = vector.load %arg3[%c0_12, %c0_13] : memref<1x32xf32, #tpu.memory_space<vmem>>, vector<1x32xf32>
    %c0_14 = arith.constant 0 : index
    %c1 = arith.constant 1 : index
    %c0_15 = arith.constant 0 : index
    %15 = vector.load %arg8[%c0_14, %c1, %c0_15] : memref<1x22x32xf32, #tpu.memory_space<vmem>>, vector<1x1x32xf32>
    %16 = vector.shape_cast %15 : vector<1x1x32xf32> to vector<1x32xf32>
    %17 = vector.shape_cast %14 : vector<1x32xf32> to vector<1x1x32xf32>
    tpu.vector_store %arg8[%c0_14, %c1, %c0_15], %17 {strides = array<i32>} : memref<1x22x32xf32, #tpu.memory_space<vmem>>, vector<1x1x32xf32>,
    %18 = vector.extract_strided_slice %8 {offsets = [0, 0], sizes = [4, 32], strides = [1, 1]} : vector<16x32xf32> to vector<4x32xf32>
    %c0_16 = arith.constant 0 : index
    %c2 = arith.constant 2 : index
    %c0_17 = arith.constant 0 : index
    %19 = vector.load %arg8[%c0_16, %c2, %c0_17] : memref<1x22x32xf32, #tpu.memory_space<vmem>>, vector<1x4x32xf32>
    %20 = vector.shape_cast %19 : vector<1x4x32xf32> to vector<4x32xf32>
    %21 = vector.shape_cast %18 : vector<4x32xf32> to vector<1x4x32xf32>
    tpu.vector_store %arg8[%c0_16, %c2, %c0_17], %21 {strides = array<i32>} : memref<1x22x32xf32, #tpu.memory_space<vmem>>, vector<1x4x32xf32>,
    %c0_18 = arith.constant 0 : index
    %c0_19 = arith.constant 0 : index
    %22 = vector.load %arg4[%c0_18, %c0_19] : memref<1x32xf32, #tpu.memory_space<vmem>>, vector<1x32xf32>
    %c0_20 = arith.constant 0 : index
    %c6 = arith.constant 6 : index
    %c0_21 = arith.constant 0 : index
    %23 = vector.load %arg8[%c0_20, %c6, %c0_21] : memref<1x22x32xf32, #tpu.memory_space<vmem>>, vector<1x1x32xf32>
    %24 = vector.shape_cast %23 : vector<1x1x32xf32> to vector<1x32xf32>
    %25 = vector.shape_cast %22 : vector<1x32xf32> to vector<1x1x32xf32>
    tpu.vector_store %arg8[%c0_20, %c6, %c0_21], %25 {strides = array<i32>} : memref<1x22x32xf32, #tpu.memory_space<vmem>>, vector<1x1x32xf32>,
    %26 = vector.extract_strided_slice %8 {offsets = [4, 0], sizes = [4, 32], strides = [1, 1]} : vector<16x32xf32> to vector<4x32xf32>
    %c0_22 = arith.constant 0 : index
    %c7 = arith.constant 7 : index
    %c0_23 = arith.constant 0 : index
    %27 = vector.load %arg8[%c0_22, %c7, %c0_23] : memref<1x22x32xf32, #tpu.memory_space<vmem>>, vector<1x4x32xf32>
    %28 = vector.shape_cast %27 : vector<1x4x32xf32> to vector<4x32xf32>
    %29 = vector.shape_cast %26 : vector<4x32xf32> to vector<1x4x32xf32>
    tpu.vector_store %arg8[%c0_22, %c7, %c0_23], %29 {strides = array<i32>} : memref<1x22x32xf32, #tpu.memory_space<vmem>>, vector<1x4x32xf32>,
    %c0_24 = arith.constant 0 : index
    %c0_25 = arith.constant 0 : index
    %30 = vector.load %arg4[%c0_24, %c0_25] : memref<1x32xf32, #tpu.memory_space<vmem>>, vector<1x32xf32>
    %c0_26 = arith.constant 0 : index
    %c11 = arith.constant 11 : index
    %c0_27 = arith.constant 0 : index
    %31 = vector.load %arg8[%c0_26, %c11, %c0_27] : memref<1x22x32xf32, #tpu.memory_space<vmem>>, vector<1x1x32xf32>
    %32 = vector.shape_cast %31 : vector<1x1x32xf32> to vector<1x32xf32>
    %33 = vector.shape_cast %30 : vector<1x32xf32> to vector<1x1x32xf32>
    tpu.vector_store %arg8[%c0_26, %c11, %c0_27], %33 {strides = array<i32>} : memref<1x22x32xf32, #tpu.memory_space<vmem>>, vector<1x1x32xf32>,
    %34 = vector.extract_strided_slice %8 {offsets = [8, 0], sizes = [4, 32], strides = [1, 1]} : vector<16x32xf32> to vector<4x32xf32>
    %c0_28 = arith.constant 0 : index
    %c12 = arith.constant 12 : index
    %c0_29 = arith.constant 0 : index
    %35 = vector.load %arg8[%c0_28, %c12, %c0_29] : memref<1x22x32xf32, #tpu.memory_space<vmem>>, vector<1x4x32xf32>
    %36 = vector.shape_cast %35 : vector<1x4x32xf32> to vector<4x32xf32>
    %37 = vector.shape_cast %34 : vector<4x32xf32> to vector<1x4x32xf32>
    tpu.vector_store %arg8[%c0_28, %c12, %c0_29], %37 {strides = array<i32>} : memref<1x22x32xf32, #tpu.memory_space<vmem>>, vector<1x4x32xf32>,
    %c0_30 = arith.constant 0 : index
    %c0_31 = arith.constant 0 : index
    %38 = vector.load %arg4[%c0_30, %c0_31] : memref<1x32xf32, #tpu.memory_space<vmem>>, vector<1x32xf32>
    %c0_32 = arith.constant 0 : index
    %c16 = arith.constant 16 : index
    %c0_33 = arith.constant 0 : index
    %39 = vector.load %arg8[%c0_32, %c16, %c0_33] : memref<1x22x32xf32, #tpu.memory_space<vmem>>, vector<1x1x32xf32>
    %40 = vector.shape_cast %39 : vector<1x1x32xf32> to vector<1x32xf32>
    %41 = vector.shape_cast %38 : vector<1x32xf32> to vector<1x1x32xf32>
    tpu.vector_store %arg8[%c0_32, %c16, %c0_33], %41 {strides = array<i32>} : memref<1x22x32xf32, #tpu.memory_space<vmem>>, vector<1x1x32xf32>,
    %42 = vector.extract_strided_slice %8 {offsets = [12, 0], sizes = [4, 32], strides = [1, 1]} : vector<16x32xf32> to vector<4x32xf32>
    %c0_34 = arith.constant 0 : index
    %c17 = arith.constant 17 : index
    %c0_35 = arith.constant 0 : index
    %43 = vector.load %arg8[%c0_34, %c17, %c0_35] : memref<1x22x32xf32, #tpu.memory_space<vmem>>, vector<1x4x32xf32>
    %44 = vector.shape_cast %43 : vector<1x4x32xf32> to vector<4x32xf32>
    %45 = vector.shape_cast %42 : vector<4x32xf32> to vector<1x4x32xf32>
    tpu.vector_store %arg8[%c0_34, %c17, %c0_35], %45 {strides = array<i32>} : memref<1x22x32xf32, #tpu.memory_space<vmem>>, vector<1x4x32xf32>,
    %c0_36 = arith.constant 0 : index
    %c0_37 = arith.constant 0 : index
    %46 = vector.load %arg5[%c0_36, %c0_37] : memref<1x32xf32, #tpu.memory_space<vmem>>, vector<1x32xf32>
    %c0_38 = arith.constant 0 : index
    %c21 = arith.constant 21 : index
    %c0_39 = arith.constant 0 : index
    %47 = vector.load %arg8[%c0_38, %c21, %c0_39] : memref<1x22x32xf32, #tpu.memory_space<vmem>>, vector<1x1x32xf32>
    %48 = vector.shape_cast %47 : vector<1x1x32xf32> to vector<1x32xf32>
    %49 = vector.shape_cast %46 : vector<1x32xf32> to vector<1x1x32xf32>
    tpu.vector_store %arg8[%c0_38, %c21, %c0_39], %49 {strides = array<i32>} : memref<1x22x32xf32, #tpu.memory_space<vmem>>, vector<1x1x32xf32>,
    return
  }
  func.func @transform_0(%arg0: i32) -> (i32, i32, i32) {
    %c0_i32 = arith.constant 0 : i32
    %c0_i32_0 = arith.constant 0 : i32
    %c0_i32_1 = arith.constant 0 : i32
    return %arg0, %c0_i32, %c0_i32_0 : i32, i32, i32
  }
  func.func @transform_1(%arg0: i32) -> (i32, i32, i32) {
    %c0_i32 = arith.constant 0 : i32
    %c0_i32_0 = arith.constant 0 : i32
    %c0_i32_1 = arith.constant 0 : i32
    return %arg0, %c0_i32, %c0_i32_0 : i32, i32, i32
  }
  func.func @transform_2(%arg0: i32) -> (i32, i32) {
    %c0_i32 = arith.constant 0 : i32
    %c0_i32_0 = arith.constant 0 : i32
    %c0_i32_1 = arith.constant 0 : i32
    return %c0_i32, %c0_i32_0 : i32, i32
  }
  func.func @transform_3(%arg0: i32) -> (i32, i32) {
    %c0_i32 = arith.constant 0 : i32
    %c0_i32_0 = arith.constant 0 : i32
    %c0_i32_1 = arith.constant 0 : i32
    return %c0_i32, %c0_i32_0 : i32, i32
  }
  func.func @transform_4(%arg0: i32) -> (i32, i32) {
    %c0_i32 = arith.constant 0 : i32
    %c0_i32_0 = arith.constant 0 : i32
    %c0_i32_1 = arith.constant 0 : i32
    return %c0_i32, %c0_i32_0 : i32, i32
  }
  func.func @transform_5(%arg0: i32) -> (i32, i32) {
    %c0_i32 = arith.constant 0 : i32
    %c0_i32_0 = arith.constant 0 : i32
    %c0_i32_1 = arith.constant 0 : i32
    return %c0_i32, %c0_i32_0 : i32, i32
  }
  func.func @transform_6(%arg0: i32) -> (i32, i32) {
    %c0_i32 = arith.constant 0 : i32
    %c0_i32_0 = arith.constant 0 : i32
    %c0_i32_1 = arith.constant 0 : i32
    return %c0_i32, %c0_i32_0 : i32, i32
  }
  func.func @transform_7(%arg0: i32) -> (i32, i32, i32) {
    %c0_i32 = arith.constant 0 : i32
    %c0_i32_0 = arith.constant 0 : i32
    %c0_i32_1 = arith.constant 0 : i32
    return %arg0, %c0_i32, %c0_i32_0 : i32, i32, i32
  }
}

</mosaic_0001>

<bundles_post_ra>
// kernel: mul.23
= control target key start
LH: loop header
LB: loop body
LE: loop exit
PB: predicated region body
PF: predicated region fallthrough
CT: control target
= control target key end

     0   :  { %vm7_vm0 = vcmask 130048   ;;  %s37_s8 = smov 16   ;;  %s38_s9 = smov 32   ;;  %vm13_vm1 = vcmask 523648   ;;  %vm19_vm2 = vcmask 392448   ;;  %vm25_vm3 = vcmask 261248   ;;  %s55_s0 = inlined_call_operand.vmem [shape: f32[4,16], index: 0, kind: input, shape index: {}]   ;;  %s56_s1 = inlined_call_operand.vmem [shape: f32[64], index: 1, kind: output, shape index: {}]  }
   0x1   :  { %v4_v0 = vld [vmem:[%s55_s0] sm:$0xf]  ;;  %s36_s0 = smov 48  }
   0x2   :  { %5 = vst [vmem:[#allocation1] sm:$0xf] %v4_v0 }
   0x9   :  { %v10_v1 = vld [vmem:[#allocation1 + $0x3] sm:$0x1]   ;;  %v22_v2 = vld [vmem:[#allocation1 + $0x1] sm:$0x1]   ;;  %v6_v3 = vld [vmem:[#allocation1] sm:$0x1]  }
   0xa   :  { %11 = vrot.lane.b32.xlu0 %v10_v1, %s36_s0  ;;  %23 = vrot.lane.b32.xlu1 %v22_v2, %s37_s8  ;;  %v16_v4 = vld [vmem:[#allocation1 + $0x2] sm:$0x1]   ;;  %8 = vst.msk [vmem:[#allocation0] sm:$0x1] %vm7_vm0, %v6_v3  }
   0xe   :  { %17 = vrot.lane.b32.xlu0 %v16_v4, %s38_s9 }
  0x7c   :  { %v12_v5 = vpop.permute.xlu0 %11   ;;  %v24_v6 = vpop.permute.xlu1 %23  }
  0x7d   :  { %14 = vst.msk [vmem:[#allocation0] sm:$0x1] %vm13_vm1, %v12_v5  }
  0x80   :  { %v18_v7 = vpop.permute.xlu0 %17  }
  0x81   :  { %20 = vst.msk [vmem:[#allocation0] sm:$0x1] %vm19_vm2, %v18_v7  }
  0x82   :  { %26 = vst.msk [vmem:[#allocation0] sm:$0x1] %vm25_vm3, %v24_v6  }
  0x89   :  { %v30_v8 = vld [vmem:[#allocation0] sm:$0x1] }
  0x8a   :  { %32 = vst [vmem:[%s56_s1] sm:$0x1] %v30_v8 }

// kernel: latent_encoder_forward.3
= control target key start
LH: loop header
LB: loop body
LE: loop exit
PB: predicated region body
PF: predicated region fallthrough
CT: control target
= control target key end

     0   :  { %vm14_vm0 = vcmask 7168   ;;  %v43_v2 = vmov 0.0   ;;  %s87_s0 = inlined_call_operand.vmem [shape: f32[8,256], index: 0, kind: input, shape index: {}]   ;;  %s88_s1 = inlined_call_operand.vmem [shape: f32[8,1], index: 1, kind: output, shape index: {0}]   ;;  %s89_s2 = inlined_call_operand.vmem [shape: f32[8,1], index: 2, kind: output, shape index: {1}]  }
   0x1   :  { %v17_v0 = vld [vmem:[%s87_s0] sm:$0xff]  ;;  %v18_v1 = vld [vmem:[%s87_s0 + $0x8] sm:$0xff]  ;;  %15 = vst.msk [vmem:[%s88_s1] sm:$0xff] %vm14_vm0, %v43_v2  ;;  %16 = vst.msk [vmem:[%s89_s2] sm:$0xff] %vm14_vm0, %v43_v2 }
   0x2   :  { %v20_v3 = vadd.f32 %v18_v1, %v17_v0  ;;  %v27_v4 = vmul.f32 %v17_v0, %v17_v0  ;;  %v28_v5 = vmul.f32 %v18_v1, %v18_v1 }
   0x4   :  { %21 = vadd.xlane.f32.xlu0 %v20_v3  ;;  %v29_v6 = vadd.f32 %v28_v5, %v27_v4 }
   0x8   :  { %30 = vadd.xlane.f32.xlu0 %v29_v6  ;;  %v19_v7 = vld [vmem:[%s88_s1] sm:$0xff] }
   0x9   :  { %v26_v10 = vld [vmem:[%s89_s2] sm:$0xff] }
  0x91   :  { %v22_v8 = vpop.xlane.xlu0 %21 }
  0x92   :  { %v23_v9 = vadd.f32 %v22_v8, %v19_v7 }
  0x94   :  { %25 = vst.msk [vmem:[%s88_s1] sm:$0xff] %vm14_vm0, %v23_v9 }
  0x95   :  { %v31_v11 = vpop.xlane.xlu0 %30 }
  0x96   :  { %v32_v12 = vadd.f32 %v31_v11, %v26_v10 }
  0x98   :  { %33 = vst.msk [vmem:[%s89_s2] sm:$0xff] %vm14_vm0, %v32_v12 }

// kernel: latent_encoder_forward.4
= control target key start
LH: loop header
LB: loop body
LE: loop exit
PB: predicated region body
PF: predicated region fallthrough
CT: control target
= control target key end

     0   :  { %vm70_vm0 = vcmask 523264   ;;  %vm142_vm1 = vcmask 257024   ;;  %vm147_vm2 = vcmask 261120   ;;  %v178_v40 = vlaneseq  ;;  %s308_s1 = inlined_call_operand.vmem [shape: bf16[64,32], index: 1, kind: input, shape index: {}]   ;;  %s309_s0 = inlined_call_operand.vmem [shape: bf16[32,64], index: 0, kind: input, shape index: {}]   ;;  %s310_s2 = inlined_call_operand.vmem [shape: f32[1,32], index: 2, kind: input, shape index: {}]   ;;  %s311_s3 = inlined_call_operand.vmem [shape: bf16[32,32], index: 3, kind: output, shape index: {0}]   ;;  %s312_s4 = inlined_call_operand.vmem [shape: f32[8,32], index: 4, kind: output, shape index: {1}]  }
   0x1   :  { %v228_v0 = vld [vmem:[%s308_s1] sm:$0xff]   ;;  %v229_v1 = vld [vmem:[%s308_s1 + $0x8] sm:$0xff]   ;;  %v230_v2 = vld [vmem:[%s308_s1 + $0x10] sm:$0xff]  }
   0x2   :  { %216 = vmatprep.subr.bf16.mxu0 %v228_v0  ;;  %v232_v3 = vld [vmem:[%s309_s0] sm:$0xff]   ;;  %v231_v4 = vld [vmem:[%s308_s1 + $0x18] sm:$0xff]   ;;  %v233_v5 = vld [vmem:[%s309_s0 + $0x8] sm:$0xff]   ;;  %v179_v45 = vshrl.u32 %v178_v40, 7 }
   0x3   :  { %217 = vmatpush3.bf16.msra.mxu0 %v228_v0  ;;  %224 = vmatprep.mubr.msk.bf16.mxu0 %vm70_vm0, %v232_v3  ;;  %v193_v6 = vld [vmem:[%s310_s2] ss:$0 sm:$0xff] }
   0x4   :  { %218 = vmatprep.subr.bf16.mxu0 %v229_v1  ;;  %vm181_vm3 = vcmp.eq.s32.totalorder %v179_v45, 1  ;;  %vm180_vm4 = vcmp.eq.s32.totalorder %v179_v45, 0 }
   0x7   :  { %219 = vmatpush3.bf16.msra.mxu0 %v229_v1 }
   0x8   :  { %220 = vmatprep.subr.bf16.mxu0 %v230_v2 }
   0xb   :  { %221 = vmatpush3.bf16.msra.mxu0 %v230_v2 }
   0xc   :  { %222 = vmatprep.subr.bf16.mxu0 %v231_v4 }
   0xf   :  { %223 = vmatpush3.bf16.msra.mxu0 %v231_v4 }
  0x12   :  { %225 = vmatmul.mubr.msk.bf16.vlgmr.msra.gmra.mrb[0].mxu0 %vm70_vm0, %v233_v5 }
  0xe5   :  { %v226_v7 = vpop.f32.mrb[0].mxu0 }
  0xe6   :  { %v120_v8 = vadd.f32 %v226_v7, %v193_v6  ;;  %v111_v9 = vpop.f32.mrb[1].mxu0 }
  0xe7   :  { %v112_v10 = vadd.f32 %v193_v6, %v111_v9  ;;  %v227_v11 = vpop.f32.mrb[2].mxu0 }
  0xe8   :  { %v208_v12 = vpack.c.bf16 %v120_v8, %v120_v8  ;;  %v123_v13 = vadd.f32 %v227_v11, %v193_v6  ;;  %v114_v14 = vpop.f32.mrb[3].mxu0  ;;  %v163_v18 = vmul.f32 %v120_v8, %v120_v8  ;;  %v151_v25 = vsel %vm147_vm2, %v120_v8, 0.0 }
  0xe9   :  { %v206_v15 = vpack.c.bf16 %v112_v10, %v112_v10  ;;  %v161_v16 = vmul.f32 %v112_v10, %v112_v10  ;;  %v115_v17 = vadd.f32 %v193_v6, %v114_v14  ;;  %v148_v20 = vsel %vm147_vm2, %v112_v10, 0.0 }
  0xea   :  { %145 = vst.msk [vmem:[%s311_s3 + $0x8] sm:$0xf] %vm142_vm1, %v208_v12  ;;  %v209_v19 = vpack.c.bf16 %v123_v13, %v123_v13  ;;  %v164_v27 = vmul.f32 %v123_v13, %v123_v13  ;;  %v168_v31 = vsel %vm147_vm2, %v163_v18, 0.0  ;;  %v153_v32 = vsel %vm147_vm2, %v123_v13, 0.0 }
  0xeb   :  { %143 = vst.msk [vmem:[%s311_s3] sm:$0xf] %vm142_vm1, %v206_v15  ;;  %v207_v21 = vpack.c.bf16 %v115_v17, %v115_v17  ;;  %v149_v22 = vsel %vm147_vm2, %v115_v17, 0.0  ;;  %v162_v23 = vmul.f32 %v115_v17, %v115_v17  ;;  %v165_v26 = vsel %vm147_vm2, %v161_v16, 0.0 }
  0xec   :  { %146 = vst.msk [vmem:[%s311_s3 + $0xc] sm:$0xf] %vm142_vm1, %v209_v19  ;;  %v150_v24 = vadd.f32 %v149_v22, %v148_v20  ;;  %v170_v35 = vsel %vm147_vm2, %v164_v27, 0.0 }
  0xed   :  { %144 = vst.msk [vmem:[%s311_s3 + $0x4] sm:$0xf] %vm142_vm1, %v207_v21  ;;  %v166_v28 = vsel %vm147_vm2, %v162_v23, 0.0 }
  0xee   :  { %v152_v29 = vadd.f32 %v151_v25, %v150_v24  ;;  %v167_v30 = vadd.f32 %v166_v28, %v165_v26 }
  0xf0   :  { %v154_v33 = vadd.f32 %v153_v32, %v152_v29  ;;  %v169_v34 = vadd.f32 %v168_v31, %v167_v30 }
  0xf2   :  { %v155_v36 = vrot.slane %v154_v33, 4  ;;  %v171_v37 = vadd.f32 %v170_v35, %v169_v34 }
  0xf4   :  { %v156_v38 = vadd.f32 %v155_v36, %v154_v33  ;;  %v172_v39 = vrot.slane %v171_v37, 4 }
  0xf6   :  { %v157_v41 = vrot.slane %v156_v38, 2  ;;  %v173_v42 = vadd.f32 %v172_v39, %v171_v37 }
  0xf8   :  { %v158_v43 = vadd.f32 %v157_v41, %v156_v38  ;;  %v174_v44 = vrot.slane %v173_v42, 2 }
  0xfa   :  { %v175_v46 = vadd.f32 %v174_v44, %v173_v42  ;;  %v159_v47 = vrot.slane %v158_v43, 1 }
  0xfc   :  { %v176_v48 = vrot.slane %v175_v46, 1  ;;  %v160_v50 = vadd.f32 %v159_v47, %v158_v43 }
  0xfe   :  { %v177_v49 = vadd.f32 %v176_v48, %v175_v46 }
 0x100   :  { %v182_v51 = vsel %vm181_vm3, %v177_v49, 0.0 }
 0x101   :  { %v183_v52 = vsel %vm180_vm4, %v160_v50, %v182_v51 }
 0x102   :  { %184 = vst.msk [vmem:[%s312_s4] sm:$0xff] %vm147_vm2, %v183_v52 }

// kernel: latent_encoder_forward.5
= control target key start
LH: loop header
LB: loop body
LE: loop exit
PB: predicated region body
PF: predicated region fallthrough
CT: control target
= control target key end

     0   :  { %s472_s24 = smov 0   ;;  %s513_s0 = inlined_call_operand.vmem [shape: bf16[2,16,32], index: 0, kind: input, shape index: {}]   ;;  %s514_s1 = inlined_call_operand.vmem [shape: f32[2,1,32], index: 1, kind: input, shape index: {}]   ;;  %s515_s2 = inlined_call_operand.vmem [shape: f32[1,32], index: 2, kind: input, shape index: {}]   ;;  %s516_s3 = inlined_call_operand.vmem [shape: f32[1,32], index: 3, kind: input, shape index: {}]   ;;  %s517_s4 = inlined_call_operand.vmem [shape: f32[1,32], index: 4, kind: input, shape index: {}]   ;;  %s518_s5 = inlined_call_operand.vmem [shape: f32[1,32], index: 5, kind: input, shape index: {}]   ;;  %s519_s6 = inlined_call_operand.vmem [shape: f32[1,32], index: 6, kind: input, shape index: {}]   ;;  %s520_s7 = inlined_call_operand.vmem [shape: f32[2,22,32], index: 7, kind: output, shape index: {}]  }
   0x1 LB: > { %s398_s25 = sadd.s32 4294967295, %s430_s24   ;;  %p402_p0 = scmp.ge.s32.totalorder %s430_s24, 1  ;;  %s430_s24 = sphi %s472_s24, %s17_s24  }
   0x2   : > { %p245_p1 = scmp.lt.s32.totalorder %s430_s24, 3 }
   0x4   : > { %p246_p2 = pnand %p402_p0, %p245_p1 }
   0x5   : > { %p280_p3 = scmp.lt.s32.totalorder (!%p246_p2), %s398_s25, 1  ;;  %v318_v0 = vld [vmem:[%s515_s2] sm:$0x1] (!%p246_p2)  ;;  %vm316_vm0 = vcmask (!%p246_p2), 253952   ;;  %vm320_vm1 = vcmask (!%p246_p2), 257024   ;;  %vm324_vm2 = vcmask (!%p246_p2), 261124  }
   0x6   : > { %249 = sbr.rel (%p246_p2) target bundleno = 26 (0x1a), region = 48  ;;  %v322_v1 = vld [vmem:[%s516_s3] sm:$0x1] (!%p246_p2) }
   0x7   : > { %v326_v2 = vld [vmem:[%s516_s3] sm:$0x1] (!%p246_p2) }
   0x8   : > { %v329_v3 = vld [vmem:[%s516_s3] sm:$0x1] (!%p246_p2) }
   0x9   : > { %v332_v4 = vld [vmem:[%s517_s4] sm:$0x1] (!%p246_p2) }
   0xa   : > { %v406_v7 = vld [vmem:[%s518_s5] ss:$0 sm:$0xff] (!%p246_p2) }
   0xb   : > { %v407_v10 = vld [vmem:[%s519_s6] ss:$0 sm:$0xff] (!%p246_p2) }
   0xd   : > { %s522_s25 = smov (!%p280_p3, %s398_s25), 1 }
   0xe   : > { %s287_s11 = scalar_lea.vmem %s514_s1, %s522_s25  ;;  %s415_s12 = smul.u32 24, %s522_s25 }
   0xf   : > { %v315_v5 = vld [vmem:[%s287_s11] sm:$0x1]  ;;  %s410_s17 = sshll.u32 %s522_s25, 3 }
  0x10   : > { %s292_s20 = scalar_lea.vmem %s520_s7, %s415_s12  ;;  %s284_s23 = scalar_lea.vmem %s513_s0, %s410_s17 }
  0x11   : > { %317 = vst.msk [vmem:[%s292_s20] sm:$0x1] %vm316_vm0, %v315_v5  ;;  %319 = vst.msk [vmem:[%s292_s20 + $0x1] sm:$0x1] %vm316_vm0, %v318_v0  ;;  %v412_v6 = vld [vmem:[%s284_s23] sm:$0xff]  }
  0x12   : > { %323 = vst.msk [vmem:[%s292_s20 + $0x6] sm:$0x1] %vm316_vm0, %v322_v1  ;;  %327 = vst.msk [vmem:[%s292_s20 + $0xb] sm:$0x1] %vm316_vm0, %v326_v2  ;;  %v413_v8 = vunpack.c.l.bf16 %v412_v6  ;;  %v414_v9 = vunpack.c.h.bf16 %v412_v6 }
  0x13   : > { %330 = vst.msk [vmem:[%s292_s20 + $0x10] sm:$0x1] %vm316_vm0, %v329_v3  ;;  %333 = vst.msk [vmem:[%s292_s20 + $0x15] sm:$0x1] %vm316_vm0, %v332_v4 }
  0x14   : > { %v304_v11 = vmul.f32 %v413_v8, %v406_v7  ;;  %v305_v12 = vmul.f32 %v414_v9, %v406_v7 }
  0x16   : > { %v313_v13 = vadd.f32 %v407_v10, %v304_v11  ;;  %v314_v14 = vadd.f32 %v407_v10, %v305_v12 }
  0x18   : > { %321 = vst.msk [vmem:[%s292_s20 + $0x2] sm:$0xf] %vm320_vm1, %v313_v13  ;;  %328 = vst.msk [vmem:[%s292_s20 + $0xc] sm:$0xf] %vm320_vm1, %v314_v14 }
  0x19   : > { %325 = vst.msk [vmem:[%s292_s20 + $0x3] sm:$0xf0] %vm324_vm2, %v313_v13  ;;  %331 = vst.msk [vmem:[%s292_s20 + $0xd] sm:$0xf0] %vm324_vm2, %v314_v14 }
  0x1a PF: > { %s17_s24 = sadd.s32 1, %s430_s24  }
  0x1b   : > { %p14_p4 = scmp.ge.s32.totalorder %s17_s24, 4  }
  0x1d   :  { %16 = sbr.rel (!%p14_p4) target bundleno = 1 (0x1), region = 81 }

</bundles_post_ra>
